<compile_context>
chip_gen: v7x
topology: tpu7x:2x2x1
jax: 0.10.0
libtpu: 0.0.40
codegen_flags: <defaults>
</compile_context>

<pallas_src>
import jax
import jax.numpy as jnp
from jax.experimental import pallas as pl
from jax.experimental.pallas import tpu as pltpu

_LANE = 128     # TPU lane width (last dim)
_SUBLANE = 8    # f32 sublane count (second-to-last dim)


def _round_up(v, m):
    return (v + m - 1) // m * m


def _mlp_kernel(x_ref,
                w1_ref, b1_ref,
                w2_ref, b2_ref,
                w3_ref, b3_ref,
                w4_ref, b4_ref,
                o_ref):
    # All operands are padded to (·, 128): matmuls are MXU-dense, stores unmasked.
    h = jnp.dot(x_ref[...], w1_ref[...], preferred_element_type=jnp.float32)
    h = jnp.maximum(h + b1_ref[...], 0.0)

    h = jnp.dot(h, w2_ref[...], preferred_element_type=jnp.float32)
    h = jnp.maximum(h + b2_ref[...], 0.0)

    h = jnp.dot(h, w3_ref[...], preferred_element_type=jnp.float32)
    h = jnp.maximum(h + b3_ref[...], 0.0)

    h = jnp.dot(h, w4_ref[...], preferred_element_type=jnp.float32)
    o_ref[...] = (h + b4_ref[...]).astype(o_ref.dtype)


def model_latent_f(x, params, *, grid_blocks=None):
    """Forward pass of ModelLatentF.

    x:      (N, x_in) float32
    params: dict with w1..w4 of shape (in, out) and b1..b4 of shape (1, out)
            (i.e. PyTorch weights transposed).
    grid_blocks: number of batch blocks (grid steps). Default: 1 for small N,
                 2 for large N (so both v7x TensorCores get work).
    """
    n, x_in = x.shape
    H = params["w1"].shape[1]
    x_out = params["w4"].shape[1]

    # Lane-pad every feature dimension.
    xi_p = _round_up(x_in, _LANE)
    h_p = _round_up(H, _LANE)
    xo_p = _round_up(x_out, _LANE)

    # Grid: 1 big block for small N; 2 parallel blocks when N is large (v7x 2 TCs).
    if grid_blocks is None:
        grid_blocks = 1 if n <= 1024 else 2
    n_pad = _round_up(n, _SUBLANE * grid_blocks)
    block_n = n_pad // grid_blocks

    # Zero-pad input (padded rows/cols are zero -> exact on the real slice).
    x_p = jnp.zeros((n_pad, xi_p), jnp.float32).at[:n, :x_in].set(
        x.astype(jnp.float32))

    def pad_w(w, rin, rout):
        return jnp.zeros((rin, rout), jnp.float32).at[:w.shape[0], :w.shape[1]].set(w)

    def pad_b(b, rout):
        return jnp.zeros((1, rout), jnp.float32).at[:, :b.shape[1]].set(b)

    w1 = pad_w(params["w1"], xi_p, h_p)
    b1 = pad_b(params["b1"], h_p)
    w2 = pad_w(params["w2"], h_p, h_p)
    b2 = pad_b(params["b2"], h_p)
    w3 = pad_w(params["w3"], h_p, h_p)
    b3 = pad_b(params["b3"], h_p)
    w4 = pad_w(params["w4"], h_p, xo_p)
    b4 = pad_b(params["b4"], xo_p)

    def full_spec(shape):
        # Entire (small) parameter array as one block, identical at every grid
        # step -> stays resident in VMEM across the whole grid.
        return pl.BlockSpec(shape, lambda i: tuple(0 for _ in shape))

    out_padded = pl.pallas_call(
        _mlp_kernel,
        out_shape=jax.ShapeDtypeStruct((n_pad, xo_p), jnp.float32),
        grid_spec=pltpu.PrefetchScalarGridSpec(
            num_scalar_prefetch=0,
            grid=(grid_blocks,),
            in_specs=[
                pl.BlockSpec((block_n, xi_p), lambda i: (i, 0)),   # x tile
                full_spec((xi_p, h_p)), full_spec((1, h_p)),
                full_spec((h_p, h_p)), full_spec((1, h_p)),
                full_spec((h_p, h_p)), full_spec((1, h_p)),
                full_spec((h_p, xo_p)), full_spec((1, xo_p)),
            ],
            out_specs=pl.BlockSpec((block_n, xo_p), lambda i: (i, 0)),
        ),
        compiler_params=pltpu.CompilerParams(
            dimension_semantics=("parallel",)),
    )(x_p, w1, b1, w2, b2, w3, b3, w4, b4)

    # Wrapper-side slice back to the logical shape (free layout plumbing).
    return out_padded[:n, :x_out]


def init_params(key, x_in, H, x_out):
    """Deterministic synthetic init (PyTorch-Linear-like uniform fan-in scaling)."""
    sizes = [(x_in, H), (H, H), (H, H), (H, x_out)]
    params = {}
    keys = jax.random.split(key, 2 * len(sizes))
    for idx, (fan_in, fan_out) in enumerate(sizes):
        bound = 1.0 / jnp.sqrt(fan_in)
        w = jax.random.uniform(keys[2 * idx], (fan_in, fan_out),
                               minval=-bound, maxval=bound, dtype=jnp.float32)
        b = jax.random.uniform(keys[2 * idx + 1], (1, fan_out),
                               minval=-bound, maxval=bound, dtype=jnp.float32)
        params[f"w{idx + 1}"] = w
        params[f"b{idx + 1}"] = b
    return params


def reference_forward(x, params):
    h = x
    for i in range(1, 4):
        h = jnp.maximum(h @ params[f"w{i}"] + params[f"b{i}"], 0.0)
    return h @ params["w4"] + params["b4"]


if __name__ == "__main__":
    # ModelLatentF(x_in=2, H=50, x_out=50) — the "w=50, d=4, in=2, out=50" dense net.
    x_in, H, x_out = 2, 50, 50
    N = 64

    key = jax.random.PRNGKey(0)
    kx, kp = jax.random.split(key)
    x = jax.random.normal(kx, (N, x_in), dtype=jnp.float32)
    params = init_params(kp, x_in, H, x_out)

    out = model_latent_f(x, params)
    out = jax.block_until_ready(out)

    ref = reference_forward(x, params)
    assert out.shape == (N, x_out)
    assert jnp.allclose(out, ref, atol=1e-5, rtol=1e-5)

    # Also exercise an odd batch size (padding path) and the 2-block grid path.
    x2 = jax.random.normal(kx, (37, x_in), dtype=jnp.float32)
    out2 = jax.block_until_ready(model_latent_f(x2, params, grid_blocks=2))
    assert out2.shape == (37, x_out)
    assert jnp.allclose(out2, reference_forward(x2, params), atol=1e-5, rtol=1e-5)

    print("KERNEL_OK")
</pallas_src>

<mosaic_0001>
module attributes {stable_mosaic.version = 11 : i64} {
  func.func @_mlp_kernel(%arg0: i32, %arg1: memref<64x128xf32, #tpu.memory_space<vmem>>, %arg2: memref<128x128xf32, #tpu.memory_space<vmem>>, %arg3: memref<1x128xf32, #tpu.memory_space<vmem>>, %arg4: memref<128x128xf32, #tpu.memory_space<vmem>>, %arg5: memref<1x128xf32, #tpu.memory_space<vmem>>, %arg6: memref<128x128xf32, #tpu.memory_space<vmem>>, %arg7: memref<1x128xf32, #tpu.memory_space<vmem>>, %arg8: memref<128x128xf32, #tpu.memory_space<vmem>>, %arg9: memref<1x128xf32, #tpu.memory_space<vmem>>, %arg10: memref<64x128xf32, #tpu.memory_space<vmem>>) attributes {dimension_semantics = [#tpu.dimension_semantics<parallel>], iteration_bounds = array<i64: 1>, scalar_prefetch = 0 : i64, scratch_operands = 0 : i64, tpu.core_type = #tpu.core_type<tc>, window_params = [{transform_indices = @transform_0, window_bounds = array<i64: 64, 128>}, {pipeline_mode = #tpu.pipeline_mode<synchronous>, transform_indices = @transform_1, window_bounds = array<i64: 128, 128>}, {pipeline_mode = #tpu.pipeline_mode<synchronous>, transform_indices = @transform_2, window_bounds = array<i64: 1, 128>}, {pipeline_mode = #tpu.pipeline_mode<synchronous>, transform_indices = @transform_3, window_bounds = array<i64: 128, 128>}, {pipeline_mode = #tpu.pipeline_mode<synchronous>, transform_indices = @transform_4, window_bounds = array<i64: 1, 128>}, {pipeline_mode = #tpu.pipeline_mode<synchronous>, transform_indices = @transform_5, window_bounds = array<i64: 128, 128>}, {pipeline_mode = #tpu.pipeline_mode<synchronous>, transform_indices = @transform_6, window_bounds = array<i64: 1, 128>}, {pipeline_mode = #tpu.pipeline_mode<synchronous>, transform_indices = @transform_7, window_bounds = array<i64: 128, 128>}, {pipeline_mode = #tpu.pipeline_mode<synchronous>, transform_indices = @transform_8, window_bounds = array<i64: 1, 128>}, {transform_indices = @transform_9, window_bounds = array<i64: 64, 128>}]} {
    %c0 = arith.constant 0 : index
    %c0_0 = arith.constant 0 : index
    %0 = vector.load %arg1[%c0, %c0_0] : memref<64x128xf32, #tpu.memory_space<vmem>>, vector<64x128xf32>
    %c0_1 = arith.constant 0 : index
    %c0_2 = arith.constant 0 : index
    %1 = vector.load %arg2[%c0_1, %c0_2] : memref<128x128xf32, #tpu.memory_space<vmem>>, vector<128x128xf32>
    %cst = arith.constant dense<0.000000e+00> : vector<64x128xf32>
    %2 = tpu.matmul %0, %1, %cst {dimension_numbers = #tpu.dot_dimension_numbers<[1], [0], [0], [1], [0, 0, 1, 1], [], []>} : vector<64x128xf32>, vector<128x128xf32>, vector<64x128xf32> -> vector<64x128xf32>
    %c0_3 = arith.constant 0 : index
    %c0_4 = arith.constant 0 : index
    %3 = vector.load %arg3[%c0_3, %c0_4] : memref<1x128xf32, #tpu.memory_space<vmem>>, vector<1x128xf32>
    %4 = vector.broadcast %3 : vector<1x128xf32> to vector<64x128xf32>
    %5 = arith.addf %2, %4 : vector<64x128xf32>
    %cst_5 = arith.constant 0.000000e+00 : f32
    %6 = vector.broadcast %cst_5 : f32 to vector<64x128xf32>
    %7 = arith.maximumf %5, %6 : vector<64x128xf32>
    %c0_6 = arith.constant 0 : index
    %c0_7 = arith.constant 0 : index
    %8 = vector.load %arg4[%c0_6, %c0_7] : memref<128x128xf32, #tpu.memory_space<vmem>>, vector<128x128xf32>
    %cst_8 = arith.constant dense<0.000000e+00> : vector<64x128xf32>
    %9 = tpu.matmul %7, %8, %cst_8 {dimension_numbers = #tpu.dot_dimension_numbers<[1], [0], [0], [1], [0, 0, 1, 1], [], []>} : vector<64x128xf32>, vector<128x128xf32>, vector<64x128xf32> -> vector<64x128xf32>
    %c0_9 = arith.constant 0 : index
    %c0_10 = arith.constant 0 : index
    %10 = vector.load %arg5[%c0_9, %c0_10] : memref<1x128xf32, #tpu.memory_space<vmem>>, vector<1x128xf32>
    %11 = vector.broadcast %10 : vector<1x128xf32> to vector<64x128xf32>
    %12 = arith.addf %9, %11 : vector<64x128xf32>
    %cst_11 = arith.constant 0.000000e+00 : f32
    %13 = vector.broadcast %cst_11 : f32 to vector<64x128xf32>
    %14 = arith.maximumf %12, %13 : vector<64x128xf32>
    %c0_12 = arith.constant 0 : index
    %c0_13 = arith.constant 0 : index
    %15 = vector.load %arg6[%c0_12, %c0_13] : memref<128x128xf32, #tpu.memory_space<vmem>>, vector<128x128xf32>
    %cst_14 = arith.constant dense<0.000000e+00> : vector<64x128xf32>
    %16 = tpu.matmul %14, %15, %cst_14 {dimension_numbers = #tpu.dot_dimension_numbers<[1], [0], [0], [1], [0, 0, 1, 1], [], []>} : vector<64x128xf32>, vector<128x128xf32>, vector<64x128xf32> -> vector<64x128xf32>
    %c0_15 = arith.constant 0 : index
    %c0_16 = arith.constant 0 : index
    %17 = vector.load %arg7[%c0_15, %c0_16] : memref<1x128xf32, #tpu.memory_space<vmem>>, vector<1x128xf32>
    %18 = vector.broadcast %17 : vector<1x128xf32> to vector<64x128xf32>
    %19 = arith.addf %16, %18 : vector<64x128xf32>
    %cst_17 = arith.constant 0.000000e+00 : f32
    %20 = vector.broadcast %cst_17 : f32 to vector<64x128xf32>
    %21 = arith.maximumf %19, %20 : vector<64x128xf32>
    %c0_18 = arith.constant 0 : index
    %c0_19 = arith.constant 0 : index
    %22 = vector.load %arg8[%c0_18, %c0_19] : memref<128x128xf32, #tpu.memory_space<vmem>>, vector<128x128xf32>
    %cst_20 = arith.constant dense<0.000000e+00> : vector<64x128xf32>
    %23 = tpu.matmul %21, %22, %cst_20 {dimension_numbers = #tpu.dot_dimension_numbers<[1], [0], [0], [1], [0, 0, 1, 1], [], []>} : vector<64x128xf32>, vector<128x128xf32>, vector<64x128xf32> -> vector<64x128xf32>
    %c0_21 = arith.constant 0 : index
    %c0_22 = arith.constant 0 : index
    %24 = vector.load %arg9[%c0_21, %c0_22] : memref<1x128xf32, #tpu.memory_space<vmem>>, vector<1x128xf32>
    %25 = vector.broadcast %24 : vector<1x128xf32> to vector<64x128xf32>
    %26 = arith.addf %23, %25 : vector<64x128xf32>
    %c0_23 = arith.constant 0 : index
    %c0_24 = arith.constant 0 : index
    %27 = vector.load %arg10[%c0_23, %c0_24] : memref<64x128xf32, #tpu.memory_space<vmem>>, vector<64x128xf32>
    tpu.vector_store %arg10[%c0_23, %c0_24], %26 {strides = array<i32>} : memref<64x128xf32, #tpu.memory_space<vmem>>, vector<64x128xf32>,
    return
  }
  func.func @transform_0(%arg0: i32) -> (i32, i32) {
    %c0_i32 = arith.constant 0 : i32
    %c0_i32_0 = arith.constant 0 : i32
    return %arg0, %c0_i32 : i32, i32
  }
  func.func @transform_1(%arg0: i32) -> (i32, i32) {
    %c0_i32 = arith.constant 0 : i32
    %c0_i32_0 = arith.constant 0 : i32
    %c0_i32_1 = arith.constant 0 : i32
    return %c0_i32, %c0_i32_0 : i32, i32
  }
  func.func @transform_2(%arg0: i32) -> (i32, i32) {
    %c0_i32 = arith.constant 0 : i32
    %c0_i32_0 = arith.constant 0 : i32
    %c0_i32_1 = arith.constant 0 : i32
    return %c0_i32, %c0_i32_0 : i32, i32
  }
  func.func @transform_3(%arg0: i32) -> (i32, i32) {
    %c0_i32 = arith.constant 0 : i32
    %c0_i32_0 = arith.constant 0 : i32
    %c0_i32_1 = arith.constant 0 : i32
    return %c0_i32, %c0_i32_0 : i32, i32
  }
  func.func @transform_4(%arg0: i32) -> (i32, i32) {
    %c0_i32 = arith.constant 0 : i32
    %c0_i32_0 = arith.constant 0 : i32
    %c0_i32_1 = arith.constant 0 : i32
    return %c0_i32, %c0_i32_0 : i32, i32
  }
  func.func @transform_5(%arg0: i32) -> (i32, i32) {
    %c0_i32 = arith.constant 0 : i32
    %c0_i32_0 = arith.constant 0 : i32
    %c0_i32_1 = arith.constant 0 : i32
    return %c0_i32, %c0_i32_0 : i32, i32
  }
  func.func @transform_6(%arg0: i32) -> (i32, i32) {
    %c0_i32 = arith.constant 0 : i32
    %c0_i32_0 = arith.constant 0 : i32
    %c0_i32_1 = arith.constant 0 : i32
    return %c0_i32, %c0_i32_0 : i32, i32
  }
  func.func @transform_7(%arg0: i32) -> (i32, i32) {
    %c0_i32 = arith.constant 0 : i32
    %c0_i32_0 = arith.constant 0 : i32
    %c0_i32_1 = arith.constant 0 : i32
    return %c0_i32, %c0_i32_0 : i32, i32
  }
  func.func @transform_8(%arg0: i32) -> (i32, i32) {
    %c0_i32 = arith.constant 0 : i32
    %c0_i32_0 = arith.constant 0 : i32
    %c0_i32_1 = arith.constant 0 : i32
    return %c0_i32, %c0_i32_0 : i32, i32
  }
  func.func @transform_9(%arg0: i32) -> (i32, i32) {
    %c0_i32 = arith.constant 0 : i32
    %c0_i32_0 = arith.constant 0 : i32
    return %arg0, %c0_i32 : i32, i32
  }
}

</mosaic_0001>

<bundles_post_ra>
// kernel: tpu_custom_call.1
= control target key start
LH: loop header
LB: loop body
LE: loop exit
PB: predicated region body
PF: predicated region fallthrough
CT: control target
= control target key end

     0   :  { %14 = vsyncpa [#allocation3], 0  ;;  %s1398_s0 = inlined_call_operand.hbm [shape: f32[64,128], index: 0, kind: input, shape index: {}]   ;;  %s1399_s1 = inlined_call_operand.hbm [shape: f32[128,128], index: 1, kind: input, shape index: {}]   ;;  %s1400_s2 = inlined_call_operand.vmem [shape: f32[1,128], index: 2, kind: input, shape index: {}]   ;;  %s1401_s3 = inlined_call_operand.hbm [shape: f32[128,128], index: 3, kind: input, shape index: {}]   ;;  %s1402_s4 = inlined_call_operand.vmem [shape: f32[1,128], index: 4, kind: input, shape index: {}]   ;;  %s1403_s5 = inlined_call_operand.hbm [shape: f32[128,128], index: 5, kind: input, shape index: {}]   ;;  %s1404_s6 = inlined_call_operand.vmem [shape: f32[1,128], index: 6, kind: input, shape index: {}]   ;;  %s1405_s7 = inlined_call_operand.hbm [shape: f32[128,128], index: 7, kind: input, shape index: {}]   ;;  %s1406_s8 = inlined_call_operand.vmem [shape: f32[1,128], index: 8, kind: input, shape index: {}]   ;;  %s1407_s9 = inlined_call_operand.hbm [shape: f32[64,128], index: 9, kind: output, shape index: {}]  }
   0x1   :  { %15 = vsyncpa [#allocation6], 0 }
   0x2   :  { %16 = vsyncpa [#allocation9], 0 }
   0x3   :  { %17 = vsyncpa [#allocation4], 0  ;;  %s1224_s30 = smov [#allocation5]   ;;  %s1225_s11 = smov [#allocation8]  }
   0x4   :  { %s35_s10 = sshll.u32 %s1224_s30, 4  ;;  %s63_s12 = sshll.u32 %s1225_s11, 4  ;;  %s36_s10 = int_to_ptr.vmem [resolvable:$true] %s35_s10  ;;  %s1282_s12 = int_to_ptr.vmem [resolvable:$true] %s63_s12 }
   0x5   :  { %s1084_s15 = scalar_lea.hbm %s1399_s1, 2048 }
   0x6   :  { %p1085_p0 = scmp.ne.s32.totalorder %s1399_s1, %s1084_s15  ;;  %p1088_p1 = scmp.lt.u32.totalorder %s1084_s15, %s1399_s1 }
   0x8   :  { %p1090_p2 = pnand %p1088_p1, %p1085_p0 }
   0xa   :  { %1093 = shalt.err (!%p1090_p2)
}
   0xb   :  { %s1094_s20 = scalar_lea.vmem %s36_s10, 2048  ;;  %p1099_p4 = scmp.lt.s32.totalorder %s36_s10, %s36_s10 }
   0xc   :  { %p1095_p3 = scmp.ne.s32.totalorder %s36_s10, %s1094_s20  ;;  %p1100_p5 = scmp.lt.s32.totalorder %s1094_s20, %s1094_s20 }
   0xe   :  { %p1101_p6 = por %p1100_p5, %p1099_p4 }
  0x10   :  { %p1102_p7 = pnand %p1101_p6, %p1095_p3 }
  0x12   :  { %1105 = shalt.err (!%p1102_p7)
}
  0x13   :  { %s1226_s21 = smov 128   ;;  %s1227_s22 = smov 8  }
  0x14   :  { %41 = dma.hbm_to_vmem [thread:$0]  %s1399_s1, 2048, %s36_s10, [#allocation6], %s1226_s21, %s1226_s21, %s1227_s22  }
  0x15   :  { %s1106_s27 = scalar_lea.hbm %s1403_s5, 2048 }
  0x16   :  { %p1107_p8 = scmp.ne.s32.totalorder %s1403_s5, %s1106_s27  ;;  %p1110_p9 = scmp.lt.u32.totalorder %s1106_s27, %s1403_s5 }
  0x18   :  { %p1112_p10 = pnand %p1110_p9, %p1107_p8 }
  0x1a   :  { %1115 = shalt.err (!%p1112_p10)
}
  0x1b   :  { %s1116_s13 = scalar_lea.vmem %s1282_s12, 2048  ;;  %p1121_p12 = scmp.lt.s32.totalorder %s1282_s12, %s1282_s12 }
  0x1c   :  { %p1117_p11 = scmp.ne.s32.totalorder %s1282_s12, %s1116_s13  ;;  %p1122_p13 = scmp.lt.s32.totalorder %s1116_s13, %s1116_s13 }
  0x1e   :  { %p1123_p0 = por %p1122_p13, %p1121_p12 }
  0x20   :  { %p1124_p1 = pnand %p1123_p0, %p1117_p11 }
  0x22   :  { %1127 = shalt.err (!%p1124_p1)
}
  0x23   :  { %69 = dma.hbm_to_vmem [thread:$0]  %s1403_s5, 2048, %s1282_s12, [#allocation9], %s1226_s21, %s1226_s21, %s1227_s22  }
  0x24   :  { %s1228_s14 = smov [#allocation2]   ;;  %s1229_s16 = smov [#allocation7]  }
  0x25   :  { %s23_s15 = sshll.u32 %s1228_s14, 4  ;;  %s49_s17 = sshll.u32 %s1229_s16, 4  ;;  %s24_s15 = int_to_ptr.vmem [resolvable:$true] %s23_s15  ;;  %s1319_s17 = int_to_ptr.vmem [resolvable:$true] %s49_s17 }
  0x26   :  { %s1128_s20 = scalar_lea.hbm %s1398_s0, 1024 }
  0x27   :  { %p1129_p2 = scmp.ne.s32.totalorder %s1398_s0, %s1128_s20  ;;  %p1132_p3 = scmp.lt.u32.totalorder %s1128_s20, %s1398_s0 }
  0x29   :  { %p1134_p4 = pnand %p1132_p3, %p1129_p2 }
  0x2b   :  { %1137 = shalt.err (!%p1134_p4)
}
  0x2c   :  { %s1138_s5 = scalar_lea.vmem %s24_s15, 1024  ;;  %p1143_p6 = scmp.lt.s32.totalorder %s24_s15, %s24_s15 }
  0x2d   :  { %p1139_p5 = scmp.ne.s32.totalorder %s24_s15, %s1138_s5  ;;  %p1144_p7 = scmp.lt.s32.totalorder %s1138_s5, %s1138_s5 }
  0x2f   :  { %p1145_p8 = por %p1144_p7, %p1143_p6 }
  0x31   :  { %p1146_p9 = pnand %p1145_p8, %p1139_p5 }
  0x33   :  { %1149 = shalt.err (!%p1146_p9)
}
  0x34   :  { %29 = dma.hbm_to_vmem [thread:$0]  %s1398_s0, 1024, %s24_s15, [#allocation3], %s1226_s21, %s1226_s21, %s1227_s22  }
  0x35   :  { %s1150_s30 = scalar_lea.hbm %s1401_s3, 2048 }
  0x36   :  { %p1151_p10 = scmp.ne.s32.totalorder %s1401_s3, %s1150_s30  ;;  %p1154_p11 = scmp.lt.u32.totalorder %s1150_s30, %s1401_s3 }
  0x38   :  { %p1156_p12 = pnand %p1154_p11, %p1151_p10 }
  0x3a   :  { %1159 = shalt.err (!%p1156_p12)
}
  0x3b   :  { %s1160_s14 = scalar_lea.vmem %s1319_s17, 2048  ;;  %p1165_p0 = scmp.lt.s32.totalorder %s1319_s17, %s1319_s17 }
  0x3c   :  { %p1161_p13 = scmp.ne.s32.totalorder %s1319_s17, %s1160_s14  ;;  %p1166_p1 = scmp.lt.s32.totalorder %s1160_s14, %s1160_s14 }
  0x3e   :  { %p1167_p2 = por %p1166_p1, %p1165_p0 }
  0x40   :  { %p1168_p3 = pnand %p1167_p2, %p1161_p13 }
  0x42   :  { %1171 = shalt.err (!%p1168_p3)
}
  0x43   :  { %55 = dma.hbm_to_vmem [thread:$0]  %s1401_s3, 2048, %s1319_s17, [#allocation6], %s1226_s21, %s1226_s21, %s1227_s22  }
  0x44   :  { %s1230_s16 = smov [#allocation10]   ;;  %s1172_s23 = scalar_lea.hbm %s1405_s7, 2048 }
  0x45   :  { %s77_s18 = sshll.u32 %s1230_s16, 4  ;;  %p1173_p4 = scmp.ne.s32.totalorder %s1405_s7, %s1172_s23  ;;  %s78_s18 = int_to_ptr.vmem [resolvable:$true] %s77_s18 }
  0x46   :  { %p1176_p5 = scmp.lt.u32.totalorder %s1172_s23, %s1405_s7 }
  0x48   :  { %p1178_p6 = pnand %p1176_p5, %p1173_p4 }
  0x4a   :  { %1181 = shalt.err (!%p1178_p6)
}
  0x4b   :  { %s1182_s12 = scalar_lea.vmem %s78_s18, 2048  ;;  %p1187_p8 = scmp.lt.s32.totalorder %s78_s18, %s78_s18 }
  0x4c   :  { %p1183_p7 = scmp.ne.s32.totalorder %s78_s18, %s1182_s12  ;;  %p1188_p9 = scmp.lt.s32.totalorder %s1182_s12, %s1182_s12 }
  0x4e   :  { %p1189_p10 = por %p1188_p9, %p1187_p8 }
  0x50   :  { %p1190_p11 = pnand %p1189_p10, %p1183_p7 }
  0x52   :  { %1193 = shalt.err (!%p1190_p11)
}
  0x53   :  { %83 = dma.hbm_to_vmem [thread:$0]  %s1405_s7, 2048, %s78_s18, [#allocation9], %s1226_s21, %s1226_s21, %s1227_s22  }
  0x54   :  { %1216 = dma.done.wait [#allocation3], 1024  }
  0x55   :  { %1217 = vsyncadd [#allocation3], 4294966272 }
  0x56   :  { %1218 = dma.done.wait [#allocation6], 4096  }
  0x57   :  { %1219 = vsyncadd [#allocation6], 4294963200 }
  0x58   :  { %1220 = dma.done.wait [#allocation9], 4096  }
  0x59   :  { %1221 = vsyncadd [#allocation9], 4294963200  ;;  %v109_v0 = vld [vmem:[#allocation5] sm:$0xff]  ;;  %v110_v1 = vld [vmem:[#allocation5 + $0x8] sm:$0xff]  ;;  %s1231_s11 = smov [#allocation11]  }
  0x5a   :  { %v111_v2 = vld [vmem:[#allocation5 + $0x10] sm:$0xff]  ;;  %v948_v3 = vpack.c.bf16 %v110_v1, %v109_v0  ;;  %v112_v4 = vld [vmem:[#allocation5 + $0x18] sm:$0xff]  ;;  %v113_v6 = vld [vmem:[#allocation5 + $0x20] sm:$0xff]  ;;  %s658_s13 = sshll.u32 %s1231_s11, 4  ;;  %s659_s13 = int_to_ptr.vmem [resolvable:$true] %s658_s13 }
  0x5b   :  { %v952_v5 = vpack.c.bf16 %v112_v4, %v111_v2  ;;  %v114_v7 = vld [vmem:[#allocation5 + $0x28] sm:$0xff]  ;;  %v101_v9 = vld [vmem:[#allocation2] sm:$0xff]  ;;  %v115_v10 = vld [vmem:[#allocation5 + $0x30] sm:$0xff]  ;;  %p1199_p13 = scmp.lt.s32.totalorder %s659_s13, %s659_s13 }
  0x5c   :  { %949 = vmatprep.subr.bf16.mxu0 %v948_v3  ;;  %v956_v8 = vpack.c.bf16 %v114_v7, %v113_v6  ;;  %v116_v11 = vld [vmem:[#allocation5 + $0x38] sm:$0xff]  ;;  %804 = vmatprep.mubr.f32.mxu0 %v101_v9  ;;  %v245_v12 = vld [vmem:[#allocation7] sm:$0xff]  ;;  %v246_v13 = vld [vmem:[#allocation7 + $0x8] sm:$0xff] }
  0x5d   :  { %951 = vmatpush3.bf16.msra.mxu0 %v948_v3  ;;  %v247_v14 = vld [vmem:[#allocation7 + $0x10] sm:$0xff]  ;;  %v960_v15 = vpack.c.bf16 %v116_v11, %v115_v10  ;;  %v117_v16 = vld [vmem:[#allocation5 + $0x40] sm:$0xff]  ;;  %v980_v17 = vpack.c.bf16 %v246_v13, %v245_v12  ;;  %v248_v18 = vld [vmem:[#allocation7 + $0x18] sm:$0xff] }
  0x5e   :  { %953 = vmatprep.subr.bf16.mxu0 %v952_v5  ;;  %v118_v19 = vld [vmem:[#allocation5 + $0x48] sm:$0xff]  ;;  %v984_v20 = vpack.c.bf16 %v248_v18, %v247_v14  ;;  %v249_v21 = vld [vmem:[#allocation7 + $0x20] sm:$0xff]  ;;  %v119_v24 = vld [vmem:[#allocation5 + $0x50] sm:$0xff] }
  0x5f   :  { %v250_v22 = vld [vmem:[#allocation7 + $0x28] sm:$0xff]  ;;  %981 = vmatprep.subr.bf16.mxu1 %v980_v17  ;;  %v964_v23 = vpack.c.bf16 %v118_v19, %v117_v16  ;;  %v120_v26 = vld [vmem:[#allocation5 + $0x58] sm:$0xff]  ;;  %v251_v27 = vld [vmem:[#allocation7 + $0x30] sm:$0xff] }
  0x60   :  { %983 = vmatpush3.bf16.msra.mxu1 %v980_v17  ;;  %v988_v25 = vpack.c.bf16 %v250_v22, %v249_v21  ;;  %v252_v28 = vld [vmem:[#allocation7 + $0x38] sm:$0xff]  ;;  %v968_v29 = vpack.c.bf16 %v120_v26, %v119_v24  ;;  %v121_v30 = vld [vmem:[#allocation5 + $0x60] sm:$0xff]  ;;  %v122_v32 = vld [vmem:[#allocation5 + $0x68] sm:$0xff] }
  0x61   :  { %955 = vmatpush3.bf16.msra.mxu0 %v952_v5  ;;  %985 = vmatprep.subr.bf16.mxu1 %v984_v20  ;;  %v992_v31 = vpack.c.bf16 %v252_v28, %v251_v27  ;;  %v253_v33 = vld [vmem:[#allocation7 + $0x40] sm:$0xff]  ;;  %v254_v34 = vld [vmem:[#allocation7 + $0x48] sm:$0xff]  ;;  %v972_v35 = vpack.c.bf16 %v122_v32, %v121_v30  ;;  %v123_v36 = vld [vmem:[#allocation5 + $0x70] sm:$0xff] }
  0x62   :  { %957 = vmatprep.subr.bf16.mxu0 %v956_v8  ;;  %v996_v37 = vpack.c.bf16 %v254_v34, %v253_v33  ;;  %v124_v38 = vld [vmem:[#allocation5 + $0x78] sm:$0xff]  ;;  %v255_v39 = vld [vmem:[#allocation7 + $0x50] sm:$0xff]  ;;  %v257_v43 = vld [vmem:[#allocation7 + $0x60] sm:$0xff] }
  0x63   :  { %v256_v40 = vld [vmem:[#allocation7 + $0x58] sm:$0xff]  ;;  %v976_v41 = vpack.c.bf16 %v124_v38, %v123_v36  ;;  %v258_v44 = vld [vmem:[#allocation7 + $0x68] sm:$0xff]  ;;  %v103_v47 = vld [vmem:[#allocation2 + $0x10] sm:$0xff] }
  0x64   :  { %987 = vmatpush3.bf16.msra.mxu1 %v984_v20  ;;  %v1000_v42 = vpack.c.bf16 %v256_v40, %v255_v39  ;;  %v1004_v45 = vpack.c.bf16 %v258_v44, %v257_v43  ;;  %v102_v46 = vld [vmem:[#allocation2 + $0x8] sm:$0xff]  ;;  %v104_v48 = vld [vmem:[#allocation2 + $0x18] sm:$0xff]  ;;  %v105_v49 = vld [vmem:[#allocation2 + $0x20] sm:$0xff] }
  0x65   :  { %959 = vmatpush3.bf16.msra.mxu0 %v956_v8  ;;  %989 = vmatprep.subr.bf16.mxu1 %v988_v25  ;;  %v106_v50 = vld [vmem:[#allocation2 + $0x28] sm:$0xff]  ;;  %v107_v51 = vld [vmem:[#allocation2 + $0x30] sm:$0xff]  ;;  %v108_v52 = vld [vmem:[#allocation2 + $0x38] sm:$0xff] }
  0x66   :  { %961 = vmatprep.subr.bf16.mxu0 %v960_v15  ;;  %v259_v53 = vld [vmem:[#allocation7 + $0x70] sm:$0xff]  ;;  %v260_v54 = vld [vmem:[#allocation7 + $0x78] sm:$0xff]  ;;  %v381_v56 = vld [vmem:[#allocation8] sm:$0xff] }
  0x67   :  { %v1008_v55 = vpack.c.bf16 %v260_v54, %v259_v53  ;;  %v382_v57 = vld [vmem:[#allocation8 + $0x8] sm:$0xff]  ;;  %v383_v58 = vld [vmem:[#allocation8 + $0x10] sm:$0xff]  ;;  %v384_v60 = vld [vmem:[#allocation8 + $0x18] sm:$0xff] }
  0x68   :  { %991 = vmatpush3.bf16.msra.mxu1 %v988_v25  ;;  %v1012_v59 = vpack.c.bf16 %v382_v57, %v381_v56  ;;  %v1016_v61 = vpack.c.bf16 %v384_v60, %v383_v58  ;;  %v385_v62 = vld [vmem:[#allocation8 + $0x20] sm:$0xff]  ;;  %v386_v63 = vld [vmem:[#allocation8 + $0x28] sm:$0xff]  ;;  %v387_v1 = vld [vmem:[#allocation8 + $0x30] sm:$0xff] }
  0x69   :  { %963 = vmatpush3.bf16.msra.mxu0 %v960_v15  ;;  %993 = vmatprep.subr.bf16.mxu1 %v992_v31  ;;  %v1020_v0 = vpack.c.bf16 %v386_v63, %v385_v62  ;;  %v388_v2 = vld [vmem:[#allocation8 + $0x38] sm:$0xff]  ;;  %v389_v4 = vld [vmem:[#allocation8 + $0x40] sm:$0xff]  ;;  %v390_v5 = vld [vmem:[#allocation8 + $0x48] sm:$0xff] }
  0x6a   :  { %965 = vmatprep.subr.bf16.mxu0 %v964_v23  ;;  %v1024_v3 = vpack.c.bf16 %v388_v2, %v387_v1  ;;  %v1028_v6 = vpack.c.bf16 %v390_v5, %v389_v4  ;;  %v391_v7 = vld [vmem:[#allocation8 + $0x50] sm:$0xff]  ;;  %v392_v8 = vld [vmem:[#allocation8 + $0x58] sm:$0xff]  ;;  %v393_v10 = vld [vmem:[#allocation8 + $0x60] sm:$0xff] }
  0x6b   :  { %v1032_v9 = vpack.c.bf16 %v392_v8, %v391_v7  ;;  %v394_v11 = vld [vmem:[#allocation8 + $0x68] sm:$0xff]  ;;  %v672_v13 = vld [vmem:[%s1400_s2] ss:$0 sm:$0xff]  ;;  %v395_v38 = vld [vmem:[#allocation8 + $0x70] sm:$0xff] }
  0x6c   :  { %995 = vmatpush3.bf16.msra.mxu1 %v992_v31  ;;  %v1036_v12 = vpack.c.bf16 %v394_v11, %v393_v10  ;;  %v396_v39 = vld [vmem:[#allocation8 + $0x78] sm:$0xff]  ;;  %v519_v43 = vld [vmem:[#allocation10 + $0x10] sm:$0xff]  ;;  %v525_v53 = vld [vmem:[#allocation10 + $0x40] sm:$0xff] }
  0x6d   :  { %967 = vmatpush3.bf16.msra.mxu0 %v964_v23  ;;  %997 = vmatprep.subr.bf16.mxu1 %v996_v37  ;;  %v1040_v40 = vpack.c.bf16 %v396_v39, %v395_v38  ;;  %v526_v54 = vld [vmem:[#allocation10 + $0x48] sm:$0xff]  ;;  %v527_v56 = vld [vmem:[#allocation10 + $0x50] sm:$0xff]  ;;  %v528_v57 = vld [vmem:[#allocation10 + $0x58] sm:$0xff] }
  0x6e   :  { %969 = vmatprep.subr.bf16.mxu0 %v968_v29  ;;  %v1064_v58 = vpack.c.bf16 %v528_v57, %v527_v56  ;;  %v530_v60 = vld [vmem:[#allocation10 + $0x68] sm:$0xff]  ;;  %v673_v62 = vld [vmem:[%s1402_s4] ss:$0 sm:$0xff] }
  0x70   :  { %999 = vmatpush3.bf16.msra.mxu1 %v996_v37 }
  0x71   :  { %971 = vmatpush3.bf16.msra.mxu0 %v968_v29  ;;  %1001 = vmatprep.subr.bf16.mxu1 %v1000_v42 }
  0x72   :  { %973 = vmatprep.subr.bf16.mxu0 %v972_v35 }
  0x74   :  { %1003 = vmatpush3.bf16.msra.mxu1 %v1000_v42  ;;  %v518_v42 = vld [vmem:[#allocation10 + $0x8] sm:$0xff] }
  0x75   :  { %975 = vmatpush3.bf16.msra.mxu0 %v972_v35  ;;  %1005 = vmatprep.subr.bf16.mxu1 %v1004_v45 }
  0x76   :  { %977 = vmatprep.subr.bf16.mxu0 %v976_v41 }
  0x78   :  { %1007 = vmatpush3.bf16.msra.mxu1 %v1004_v45  ;;  %v520_v45 = vld [vmem:[#allocation10 + $0x18] sm:$0xff] }
  0x79   :  { %979 = vmatpush3.bf16.msra.mxu0 %v976_v41  ;;  %1009 = vmatprep.subr.bf16.mxu1 %v1008_v55  ;;  %v517_v41 = vld [vmem:[#allocation10] sm:$0xff] }
  0x7a   :  { %1013 = vmatprep.subr.bf16.mxu0 %v1012_v59  ;;  %v1044_v44 = vpack.c.bf16 %v518_v42, %v517_v41 }
  0x7c   :  { %805 = vmatmul.mubr.f32.vlgmr.msra.gmra.mrb[0].mxu0 %v102_v46  ;;  %1011 = vmatpush3.bf16.msra.mxu1 %v1008_v55  ;;  %v1048_v46 = vpack.c.bf16 %v520_v45, %v519_v43  ;;  %v1060_v55 = vpack.c.bf16 %v526_v54, %v525_v53 }
  0x7d   :  { %807 = vmatprep.mubr.f32.mxu0 %v103_v47  ;;  %1015 = vmatpush3.bf16.msra.mxu0 %v1012_v59  ;;  %v521_v47 = vld [vmem:[#allocation10 + $0x20] sm:$0xff] }
  0x7e   :  { %1017 = vmatprep.subr.bf16.mxu0 %v1016_v61  ;;  %1045 = vmatprep.subr.bf16.mxu1 %v1044_v44  ;;  %v529_v59 = vld [vmem:[#allocation10 + $0x60] sm:$0xff] }
  0x80   :  { %808 = vmatmul.mubr.f32.gmra.mrb[2].mxu0 %v104_v48  ;;  %v522_v48 = vld [vmem:[#allocation10 + $0x28] sm:$0xff] }
  0x81   :  { %810 = vmatprep.mubr.f32.mxu0 %v105_v49  ;;  %1019 = vmatpush3.bf16.msra.mxu0 %v1016_v61  ;;  %v1052_v49 = vpack.c.bf16 %v522_v48, %v521_v47  ;;  %v1068_v61 = vpack.c.bf16 %v530_v60, %v529_v59 }
  0x82   :  { %1021 = vmatprep.subr.bf16.mxu0 %v1020_v0 }
  0x84   :  { %811 = vmatmul.mubr.f32.gmra.mrb[4].mxu0 %v106_v50  ;;  %v523_v50 = vld [vmem:[#allocation10 + $0x30] sm:$0xff] }
  0x85   :  { %813 = vmatprep.mubr.f32.mxu0 %v107_v51  ;;  %1023 = vmatpush3.bf16.msra.mxu0 %v1020_v0  ;;  %v524_v51 = vld [vmem:[#allocation10 + $0x38] sm:$0xff] }
  0x86   :  { %1025 = vmatprep.subr.bf16.mxu0 %v1024_v3 }
  0x88   :  { %814 = vmatmul.mubr.f32.gmra.mrb[6].mxu0 %v108_v52  ;;  %v1056_v52 = vpack.c.bf16 %v524_v51, %v523_v50  ;;  %v675_v51 = vld [vmem:[%s1406_s8] ss:$0 sm:$0xff]  ;;  %s1194_s8 = scalar_lea.vmem %s659_s13, 1024 }
  0x89   :  { %1027 = vmatpush3.bf16.msra.mxu0 %v1024_v3  ;;  %p1195_p12 = scmp.ne.s32.totalorder %s659_s13, %s1194_s8  ;;  %p1200_p0 = scmp.lt.s32.totalorder %s1194_s8, %s1194_s8 }
  0x8a   :  { %1029 = vmatprep.subr.bf16.mxu0 %v1028_v6 }
  0x8b   :  { %p1201_p1 = por %p1200_p0, %p1199_p13 }
  0x8d   :  { %1031 = vmatpush3.bf16.msra.mxu0 %v1028_v6  ;;  %p1202_p2 = pnand %p1201_p1, %p1195_p12 }
  0x8e   :  { %1033 = vmatprep.subr.bf16.mxu0 %v1032_v9 }
  0x91   :  { %1035 = vmatpush3.bf16.msra.mxu0 %v1032_v9 }
  0x92   :  { %1037 = vmatprep.subr.bf16.mxu0 %v1036_v12 }
  0x95   :  { %1039 = vmatpush3.bf16.msra.mxu0 %v1036_v12 }
  0x96   :  { %1041 = vmatprep.subr.bf16.mxu0 %v1040_v40 }
  0x99   :  { %1043 = vmatpush3.bf16.msra.mxu0 %v1040_v40 }
 0x14f   :  { %v806_v14 = vpop.f32.mrb[0].mxu0 }
 0x150   :  { %v204_v15 = vadd.f32 %v806_v14, %v672_v13  ;;  %v198_v16 = vpop.f32.mrb[1].mxu0 }
 0x151   :  { %v199_v17 = vadd.f32 %v672_v13, %v198_v16 }
 0x152   :  { %v238_v20 = vmax.f32 %v204_v15, 0.0 }
 0x153   :  { %v809_v18 = vpop.f32.mrb[2].mxu0  ;;  %v237_v19 = vmax.f32 %v199_v17, 0.0 }
 0x154   :  { %v214_v21 = vadd.f32 %v809_v18, %v672_v13  ;;  %v208_v22 = vpop.f32.mrb[3].mxu0 }
 0x155   :  { %v209_v23 = vadd.f32 %v672_v13, %v208_v22  ;;  %848 = vmatprep.mubr.f32.mxu1 %v237_v19 }
 0x156   :  { %849 = vmatmul.mubr.f32.vlgmr.msra.gmra.mrb[0].mxu1 %v238_v20  ;;  %v240_v26 = vmax.f32 %v214_v21, 0.0 }
 0x157   :  { %v239_v24 = vmax.f32 %v209_v23, 0.0  ;;  %v812_v25 = vpop.f32.mrb[4].mxu0  ;;  %1047 = vmatpush3.bf16.msra.mxu1 %v1044_v44  ;;  %v531_v23 = vld [vmem:[#allocation10 + $0x70] sm:$0xff] }
 0x158   :  { %v224_v27 = vadd.f32 %v812_v25, %v672_v13  ;;  %v218_v28 = vpop.f32.mrb[5].mxu0  ;;  %1049 = vmatprep.subr.bf16.mxu1 %v1048_v46 }
 0x159   :  { %v219_v29 = vadd.f32 %v672_v13, %v218_v28  ;;  %851 = vmatprep.mubr.f32.mxu1 %v239_v24  ;;  %v532_v24 = vld [vmem:[#allocation10 + $0x78] sm:$0xff] }
 0x15a   :  { %852 = vmatmul.mubr.f32.gmra.mrb[2].mxu1 %v240_v26  ;;  %v242_v32 = vmax.f32 %v224_v27, 0.0  ;;  %v1072_v25 = vpack.c.bf16 %v532_v24, %v531_v23  ;;  %v674_v26 = vld [vmem:[%s1404_s6] ss:$0 sm:$0xff] }
 0x15b   :  { %v241_v30 = vmax.f32 %v219_v29, 0.0  ;;  %v815_v31 = vpop.f32.mrb[6].mxu0  ;;  %1051 = vmatpush3.bf16.msra.mxu1 %v1048_v46 }
 0x15c   :  { %v234_v33 = vadd.f32 %v815_v31, %v672_v13  ;;  %v228_v34 = vpop.f32.mrb[7].mxu0  ;;  %1053 = vmatprep.subr.bf16.mxu1 %v1052_v49 }
 0x15d   :  { %v229_v35 = vadd.f32 %v672_v13, %v228_v34  ;;  %854 = vmatprep.mubr.f32.mxu1 %v241_v30 }
 0x15e   :  { %855 = vmatmul.mubr.f32.gmra.mrb[4].mxu1 %v242_v32  ;;  %v244_v37 = vmax.f32 %v234_v33, 0.0 }
 0x15f   :  { %v243_v36 = vmax.f32 %v229_v35, 0.0  ;;  %1055 = vmatpush3.bf16.msra.mxu1 %v1052_v49 }
 0x160   :  { %1057 = vmatprep.subr.bf16.mxu1 %v1056_v52 }
 0x161   :  { %857 = vmatprep.mubr.f32.mxu1 %v243_v36 }
 0x162   :  { %858 = vmatmul.mubr.f32.gmra.mrb[6].mxu1 %v244_v37 }
 0x163   :  { %1059 = vmatpush3.bf16.msra.mxu1 %v1056_v52 }
 0x164   :  { %1061 = vmatprep.subr.bf16.mxu1 %v1060_v55 }
 0x167   :  { %1063 = vmatpush3.bf16.msra.mxu1 %v1060_v55 }
 0x168   :  { %1065 = vmatprep.subr.bf16.mxu1 %v1064_v58 }
 0x16b   :  { %1067 = vmatpush3.bf16.msra.mxu1 %v1064_v58 }
 0x16c   :  { %1069 = vmatprep.subr.bf16.mxu1 %v1068_v61 }
 0x16f   :  { %1071 = vmatpush3.bf16.msra.mxu1 %v1068_v61 }
 0x170   :  { %1073 = vmatprep.subr.bf16.mxu1 %v1072_v25 }
 0x173   :  { %1075 = vmatpush3.bf16.msra.mxu1 %v1072_v25 }
 0x229   :  { %v850_v63 = vpop.f32.mrb[0].mxu1 }
 0x22a   :  { %v340_v0 = vadd.f32 %v850_v63, %v673_v62  ;;  %v334_v1 = vpop.f32.mrb[1].mxu1 }
 0x22b   :  { %v335_v2 = vadd.f32 %v673_v62, %v334_v1 }
 0x22c   :  { %v374_v5 = vmax.f32 %v340_v0, 0.0 }
 0x22d   :  { %v373_v3 = vmax.f32 %v335_v2, 0.0  ;;  %v853_v4 = vpop.f32.mrb[2].mxu1 }
 0x22e   :  { %v350_v6 = vadd.f32 %v853_v4, %v673_v62  ;;  %v344_v7 = vpop.f32.mrb[3].mxu1 }
 0x22f   :  { %v345_v8 = vadd.f32 %v673_v62, %v344_v7  ;;  %892 = vmatprep.mubr.f32.mxu0 %v373_v3 }
 0x230   :  { %893 = vmatmul.mubr.f32.vlgmr.msra.gmra.mrb[8].mxu0 %v374_v5  ;;  %v376_v11 = vmax.f32 %v350_v6, 0.0 }
 0x231   :  { %v375_v9 = vmax.f32 %v345_v8, 0.0  ;;  %v856_v10 = vpop.f32.mrb[4].mxu1 }
 0x232   :  { %v360_v12 = vadd.f32 %v856_v10, %v673_v62  ;;  %v354_v13 = vpop.f32.mrb[5].mxu1 }
 0x233   :  { %v355_v14 = vadd.f32 %v673_v62, %v354_v13  ;;  %895 = vmatprep.mubr.f32.mxu0 %v375_v9 }
 0x234   :  { %896 = vmatmul.mubr.f32.gmra.mrb[10].mxu0 %v376_v11  ;;  %v378_v17 = vmax.f32 %v360_v12, 0.0 }
 0x235   :  { %v377_v15 = vmax.f32 %v355_v14, 0.0  ;;  %v859_v16 = vpop.f32.mrb[6].mxu1 }
 0x236   :  { %v370_v18 = vadd.f32 %v859_v16, %v673_v62  ;;  %v364_v19 = vpop.f32.mrb[7].mxu1 }
 0x237   :  { %v365_v20 = vadd.f32 %v673_v62, %v364_v19  ;;  %898 = vmatprep.mubr.f32.mxu0 %v377_v15 }
 0x238   :  { %899 = vmatmul.mubr.f32.gmra.mrb[12].mxu0 %v378_v17  ;;  %v380_v22 = vmax.f32 %v370_v18, 0.0 }
 0x239   :  { %v379_v21 = vmax.f32 %v365_v20, 0.0 }
 0x23b   :  { %901 = vmatprep.mubr.f32.mxu0 %v379_v21 }
 0x23c   :  { %902 = vmatmul.mubr.f32.gmra.mrb[14].mxu0 %v380_v22 }
 0x303   :  { %v894_v27 = vpop.f32.mrb[8].mxu0 }
 0x304   :  { %v476_v28 = vadd.f32 %v894_v27, %v674_v26  ;;  %v470_v29 = vpop.f32.mrb[9].mxu0 }
 0x305   :  { %v471_v30 = vadd.f32 %v674_v26, %v470_v29 }
 0x306   :  { %v510_v33 = vmax.f32 %v476_v28, 0.0 }
 0x307   :  { %v509_v31 = vmax.f32 %v471_v30, 0.0  ;;  %v897_v32 = vpop.f32.mrb[10].mxu0 }
 0x308   :  { %v486_v34 = vadd.f32 %v897_v32, %v674_v26  ;;  %v480_v35 = vpop.f32.mrb[11].mxu0 }
 0x309   :  { %v481_v36 = vadd.f32 %v674_v26, %v480_v35  ;;  %936 = vmatprep.mubr.f32.mxu1 %v509_v31 }
 0x30a   :  { %937 = vmatmul.mubr.f32.vlgmr.msra.gmra.mrb[8].mxu1 %v510_v33  ;;  %v512_v39 = vmax.f32 %v486_v34, 0.0 }
 0x30b   :  { %v511_v37 = vmax.f32 %v481_v36, 0.0  ;;  %v900_v38 = vpop.f32.mrb[12].mxu0 }
 0x30c   :  { %v496_v40 = vadd.f32 %v900_v38, %v674_v26  ;;  %v490_v41 = vpop.f32.mrb[13].mxu0 }
 0x30d   :  { %v491_v42 = vadd.f32 %v674_v26, %v490_v41  ;;  %939 = vmatprep.mubr.f32.mxu1 %v511_v37 }
 0x30e   :  { %940 = vmatmul.mubr.f32.gmra.mrb[10].mxu1 %v512_v39  ;;  %v514_v45 = vmax.f32 %v496_v40, 0.0 }
 0x30f   :  { %v513_v43 = vmax.f32 %v491_v42, 0.0  ;;  %v903_v44 = vpop.f32.mrb[14].mxu0 }
 0x310   :  { %v506_v46 = vadd.f32 %v903_v44, %v674_v26  ;;  %v500_v47 = vpop.f32.mrb[15].mxu0 }
 0x311   :  { %v501_v48 = vadd.f32 %v674_v26, %v500_v47  ;;  %942 = vmatprep.mubr.f32.mxu1 %v513_v43 }
 0x312   :  { %943 = vmatmul.mubr.f32.gmra.mrb[12].mxu1 %v514_v45  ;;  %v516_v50 = vmax.f32 %v506_v46, 0.0 }
 0x313   :  { %v515_v49 = vmax.f32 %v501_v48, 0.0 }
 0x315   :  { %945 = vmatprep.mubr.f32.mxu1 %v515_v49 }
 0x316   :  { %946 = vmatmul.mubr.f32.gmra.mrb[14].mxu1 %v516_v50 }
 0x3dd   :  { %v938_v52 = vpop.f32.mrb[8].mxu1 }
 0x3de   :  { %v612_v53 = vadd.f32 %v938_v52, %v675_v51  ;;  %v606_v54 = vpop.f32.mrb[9].mxu1 }
 0x3df   :  { %v607_v55 = vadd.f32 %v675_v51, %v606_v54 }
 0x3e0   :  { %646 = vst [vmem:[#allocation11 + $0x8] sm:$0xff] %v612_v53 }
 0x3e1   :  { %645 = vst [vmem:[#allocation11] sm:$0xff] %v607_v55  ;;  %v941_v56 = vpop.f32.mrb[10].mxu1 }
 0x3e2   :  { %v622_v57 = vadd.f32 %v941_v56, %v675_v51  ;;  %v616_v58 = vpop.f32.mrb[11].mxu1 }
 0x3e3   :  { %v617_v59 = vadd.f32 %v675_v51, %v616_v58 }
 0x3e4   :  { %648 = vst [vmem:[#allocation11 + $0x18] sm:$0xff] %v622_v57 }
 0x3e5   :  { %647 = vst [vmem:[#allocation11 + $0x10] sm:$0xff] %v617_v59  ;;  %v944_v60 = vpop.f32.mrb[12].mxu1 }
 0x3e6   :  { %v632_v61 = vadd.f32 %v944_v60, %v675_v51  ;;  %v626_v62 = vpop.f32.mrb[13].mxu1 }
 0x3e7   :  { %v627_v63 = vadd.f32 %v675_v51, %v626_v62 }
 0x3e8   :  { %650 = vst [vmem:[#allocation11 + $0x28] sm:$0xff] %v632_v61 }
 0x3e9   :  { %649 = vst [vmem:[#allocation11 + $0x20] sm:$0xff] %v627_v63  ;;  %v947_v0 = vpop.f32.mrb[14].mxu1 }
 0x3ea   :  { %v642_v1 = vadd.f32 %v947_v0, %v675_v51  ;;  %v636_v2 = vpop.f32.mrb[15].mxu1 }
 0x3eb   :  { %v637_v3 = vadd.f32 %v675_v51, %v636_v2 }
 0x3ec   :  { %652 = vst [vmem:[#allocation11 + $0x38] sm:$0xff] %v642_v1 }
 0x3ed   :  { %651 = vst [vmem:[#allocation11 + $0x30] sm:$0xff] %v637_v3 }
 0x3ee   :  { %1205 = shalt.err (!%p1202_p2)
}
 0x3ef   :  { %s1206_s14 = scalar_lea.hbm %s1407_s9, 1024 }
 0x3f0   :  { %p1207_p3 = scmp.ne.s32.totalorder %s1407_s9, %s1206_s14  ;;  %p1210_p4 = scmp.lt.u32.totalorder %s1206_s14, %s1407_s9 }
 0x3f2   :  { %p1212_p5 = pnand %p1210_p4, %p1207_p3 }
 0x3f4   :  { %1215 = shalt.err (!%p1212_p5)
}
 0x3f5   :  { %664 = dma.vmem_to_hbm [thread:$0]  %s659_s13, 1024, %s1407_s9, [#allocation4], %s1226_s21, %s1226_s21, %s1227_s22  }
 0x3f6   :  { %1222 = dma.done.wait [#allocation4], 1024  }
 0x3f7   :  { %1223 = vsyncadd [#allocation4], 4294966272 }
 0x3f8   :  { %668 = vsyncpa [#allocation3], 1 }
 0x3f9   :  { %669 = vsyncpa [#allocation6], 1 }
 0x3fa   :  { %670 = vsyncpa [#allocation9], 1 }
 0x3fb   :  { %671 = vsyncpa [#allocation4], 1 }

</bundles_post_ra>
